<compile_context>
chip_gen: v6e
topology: v6e:2x2x1
jax: 0.10.0
libtpu: 0.0.40
codegen_flags: <defaults>
</compile_context>

<pallas_src>
import numpy as np

import jax
import jax.numpy as jnp
from jax.experimental import pallas as pl
from jax.experimental.pallas import tpu as pltpu

# ----------------------------- configuration --------------------------------
BATCH = 5          # batch * mask_range must match the final reshape
SEQ = 16
HIDDEN = 32
VOCAB = 128        # >= 104 so that the [MASK] id (103) is a valid token
MASK_ID = 103
K = 3
BEAM_NUMS = 3
MASK_RANGE = 5     # each example carries exactly MASK_RANGE masked positions


# --------------------------- Pallas fused kernel -----------------------------
def mlm_fused_kernel(ids_ref, table_ref, probs_ref):
    """softmax(one_hot(ids) @ table) over the vocab (lane) axis.

    ids_ref:   [R, 1]  int32   (R rows, multiple of 8)
    table_ref: [V, V]  bf16    (precomputed emb @ W + b)
    probs_ref: [R, V]  f32
    """
    rows, vocab = probs_ref.shape

    # In-kernel embedding+head "gather" via a single lane-dense one-hot matmul
    # on the MXU (compare/select on VPU, matmul on MXU -> no slot saturates).
    ids = ids_ref[...]                                              # [R, 1] i32
    lane_iota = jax.lax.broadcasted_iota(jnp.int32, (rows, vocab), 1)
    one_hot = (lane_iota == ids).astype(table_ref.dtype)            # [R, V] bf16 (exact)
    logits = jnp.dot(one_hot, table_ref[...],
                     preferred_element_type=jnp.float32)            # [R, V] f32

    # Numerically stable softmax; exact reciprocal (free: EUP/VALU have slack).
    m = jnp.max(logits, axis=-1, keepdims=True)
    e = jnp.exp(logits - m)
    denom = jnp.sum(e, axis=-1, keepdims=True)
    probs_ref[...] = e * pl.reciprocal(denom, approx=False)


def mlm_fused_probs(ids_col, table):
    """ids_col: [R,1] int32, table: [V,V] bf16 -> softmax probs [R,V] f32."""
    rows = ids_col.shape[0]
    vocab = table.shape[0]
    assert rows % 8 == 0, "row count must be a multiple of 8 (sublane tiling)"
    vmem = pl.BlockSpec(memory_space=pltpu.MemorySpace.VMEM)
    return pl.pallas_call(
        mlm_fused_kernel,
        out_shape=jax.ShapeDtypeStruct((rows, vocab), jnp.float32),
        in_specs=[vmem, vmem],
        out_specs=vmem,
    )(ids_col, table)


# ------------------------- host-side beam search ------------------------------
def beam_search_from_topk(topk_scores_all, topk_index_all, beam_nums, max_length):
    """Port of MLMForParagraph.beam_search, consuming precomputed per-position
    top-k (scores/index of shape [L, beam]) produced on device."""
    prev_scores = None
    prev_index = None
    for position in range(max_length):
        topk_scores = topk_scores_all[position]                       # (beam,)
        topk_index = topk_index_all[position]                         # (beam,)
        if position == 0:
            prev_scores = topk_scores
            prev_index = topk_index.reshape(beam_nums, 1)             # (beam, 1)
        else:
            cand_scores = np.matmul(
                prev_scores.reshape(beam_nums, -1),
                topk_scores.reshape(-1, beam_nums),
            ).reshape(-1, beam_nums * beam_nums)                      # (1, beam^2)
            order = np.argsort(-cand_scores[0], kind="stable")[:beam_nums]
            topk_cand_scores = cand_scores[:, order]                  # (1, beam)
            topk_cand_index = order.reshape(1, beam_nums)
            first_index = (topk_cand_index // beam_nums).reshape(beam_nums, -1)
            cur_index = (topk_cand_index % beam_nums).reshape(beam_nums, -1)
            first_index = np.broadcast_to(
                first_index, (beam_nums, prev_index.shape[-1])
            )
            # torch .gather(0, idx): out[i, j] = src[idx[i, j], j]
            first_index = np.take_along_axis(prev_index, first_index, axis=0)
            cur_index = np.take_along_axis(
                topk_index.reshape(beam_nums, -1), cur_index, axis=0
            )
            prev_index = np.concatenate((first_index, cur_index), axis=1)
            prev_scores = topk_cand_scores
    return (
        np.power(prev_scores.reshape(-1, beam_nums), -1.0 / float(max_length)),
        prev_index,
    )


# ------------------------------- full forward --------------------------------
class MLMForParagraphPallas:
    def __init__(self, key, k=K, beam_nums=BEAM_NUMS, mask_range=MASK_RANGE):
        self.k = k
        self.beam_nums = beam_nums
        self.mask_range = mask_range
        k_emb, k_w, k_b = jax.random.split(key, 3)
        # Deterministic synthetic "pretrained MLM" parameters.
        emb = jax.random.normal(k_emb, (VOCAB, HIDDEN), jnp.float32) * 0.1
        w = jax.random.normal(k_w, (HIDDEN, VOCAB), jnp.float32) * 0.1
        b = jax.random.normal(k_b, (1, VOCAB), jnp.float32) * 0.1
        # Fuse the two matmuls + bias into one constant 128x128 table (bf16:
        # exact for the one-hot operand, well within top-k tolerance for logits,
        # and MXU-native on v5e).
        self.table = (jnp.dot(emb, w) + b).astype(jnp.bfloat16)       # [V, V]
        # jit hoisted out of forward(): one trace, one cached executable.
        self._device_jit = jax.jit(self._device_topk)

    def _device_topk(self, ids_pad):
        """ids_pad: [R_pad] int32 -> per-row top-beam (scores, indices)."""
        probs = mlm_fused_probs(ids_pad.reshape(-1, 1), self.table)   # [R_pad, V]
        # On-device top-k: D2H shrinks from R_pad*V f32 to 2 * R_pad * beam.
        return jax.lax.top_k(probs, self.beam_nums)

    def forward(self, input_ids):
        ids_np = np.asarray(input_ids)
        batch = ids_np.shape[0]

        # Gather only the rows the beam search consumes: the masked positions'
        # token ids, in per-example ascending-position order (known pre-dispatch).
        masked_positions = [
            np.nonzero(ids_np[i] == MASK_ID)[0] for i in range(batch)
        ]
        counts = [int(p.shape[0]) for p in masked_positions]
        total = int(sum(counts))
        assert total > 0, "no masked positions found"
        masked_ids = np.concatenate(
            [ids_np[i][p] for i, p in enumerate(masked_positions)]
        ).astype(np.int32)                                            # [total]
        r_pad = max(8, ((total + 7) // 8) * 8)                        # 25 -> 32
        ids_pad = np.zeros((r_pad,), np.int32)
        ids_pad[:total] = masked_ids

        # One device dispatch + one tiny device->host transfer per forward().
        scores_dev, index_dev = self._device_jit(jnp.asarray(ids_pad))
        scores_dev = jax.block_until_ready(scores_dev)
        topk_scores_all = np.asarray(scores_dev)[:total]              # [total, beam]
        topk_index_all = np.asarray(index_dev)[:total]                # [total, beam]

        all_scores = []
        all_index = []
        offset = 0
        for i in range(batch):
            n_mask = counts[i]
            s = topk_scores_all[offset:offset + n_mask]               # (L, beam)
            idx = topk_index_all[offset:offset + n_mask]
            offset += n_mask
            beam_scores, beam_index = beam_search_from_topk(
                s, idx, self.beam_nums, n_mask
            )
            for bi in range(self.beam_nums):
                all_index.append(beam_index[bi])
            all_scores.append(beam_scores)

        all_scores = np.concatenate(all_scores, axis=-1).reshape(
            -1, self.beam_nums * self.mask_range
        )
        # torch.topk(largest=False): smallest k, ascending.
        topk_scores_rows = []
        topk_index_rows = []
        for i in range(all_scores.shape[0]):
            order = np.argsort(all_scores[i], kind="stable")[: self.k]
            topk_index_rows.append(order)
            topk_scores_rows.append(all_scores[i][order])
        topk_scores = np.stack(topk_scores_rows, axis=0)

        cand_tokens = []
        for i, index_row in enumerate(topk_index_rows):
            tokens = [
                all_index[i * all_scores.shape[-1] + int(j)].tolist()
                for j in index_row
            ]
            cand_tokens.append(tokens)
        return topk_scores.tolist(), cand_tokens


# ---------------------------------- main --------------------------------------
if __name__ == "__main__":
    root = jax.random.PRNGKey(0)
    k_param, k_ids = jax.random.split(root, 2)

    model = MLMForParagraphPallas(k_param)

    # Deterministic input ids with exactly MASK_RANGE [MASK] tokens per example.
    ids = jax.random.randint(k_ids, (BATCH, SEQ), 0, VOCAB, dtype=jnp.int32)
    ids = jnp.where(ids == MASK_ID, jnp.int32(MASK_ID + 1), ids)  # clear strays
    mask_positions = (
        jnp.arange(MASK_RANGE)[None, :] * 3 + jnp.arange(BATCH)[:, None]
    ) % SEQ                                                       # (B, MASK_RANGE)
    ids = jnp.stack(
        [ids[i].at[mask_positions[i]].set(MASK_ID) for i in range(BATCH)]
    )

    topk_scores, cand_tokens = model.forward(ids)
    # Sanity: host-side result structure matches the torch reference.
    assert len(cand_tokens) == len(topk_scores)
    assert all(len(row) == K for row in cand_tokens)
    jax.block_until_ready(jnp.asarray(topk_scores))
    print("KERNEL_OK")
</pallas_src>

<mosaic_0001>
module attributes {stable_mosaic.version = 11 : i64} {
  func.func @mlm_fused_kernel(%arg0: memref<32x1xi32, #tpu.memory_space<vmem>>, %arg1: memref<128x128xbf16, #tpu.memory_space<vmem>>, %arg2: memref<32x128xf32, #tpu.memory_space<vmem>>) attributes {dimension_semantics = [], scalar_prefetch = 0 : i64, scratch_operands = 0 : i64, tpu.core_type = #tpu.core_type<tc>} {
    %c0 = arith.constant 0 : index
    %c0_0 = arith.constant 0 : index
    %0 = vector.load %arg0[%c0, %c0_0] : memref<32x1xi32, #tpu.memory_space<vmem>>, vector<32x1xi32>
    %1 = tpu.iota {dimensions = array<i32: 1>} : vector<32x128xi32>
    %2 = vector.broadcast %0 : vector<32x1xi32> to vector<32x128xi32>
    %3 = arith.cmpi eq, %1, %2 : vector<32x128xi32>
    %4 = arith.extui %3 : vector<32x128xi1> to vector<32x128xi32>
    %5 = arith.sitofp %4 : vector<32x128xi32> to vector<32x128xf32>
    %6 = arith.truncf %5 : vector<32x128xf32> to vector<32x128xbf16>
    %c0_1 = arith.constant 0 : index
    %c0_2 = arith.constant 0 : index
    %7 = vector.load %arg1[%c0_1, %c0_2] : memref<128x128xbf16, #tpu.memory_space<vmem>>, vector<128x128xbf16>
    %cst = arith.constant dense<0.000000e+00> : vector<32x128xf32>
    %8 = tpu.matmul %6, %7, %cst {dimension_numbers = #tpu.dot_dimension_numbers<[1], [0], [0], [1], [0, 0, 1, 1], [], []>} : vector<32x128xbf16>, vector<128x128xbf16>, vector<32x128xf32> -> vector<32x128xf32>
    %cst_3 = arith.constant dense<0xFF800000> : vector<32xf32>
    %9 = vector.multi_reduction <maximumf>, %8, %cst_3 [1] : vector<32x128xf32> to vector<32xf32>
    %10 = vector.shape_cast %9 : vector<32xf32> to vector<32x1xf32>
    %11 = vector.broadcast %10 : vector<32x1xf32> to vector<32x128xf32>
    %12 = arith.subf %8, %11 : vector<32x128xf32>
    %13 = math.exp %12 : vector<32x128xf32>
    %cst_4 = arith.constant dense<0.000000e+00> : vector<32xf32>
    %14 = vector.multi_reduction <add>, %13, %cst_4 [1] : vector<32x128xf32> to vector<32xf32>
    %15 = vector.shape_cast %14 : vector<32xf32> to vector<32x1xf32>
    %16 = tpu.reciprocal %15 : vector<32x1xf32> -> vector<32x1xf32>
    %17 = vector.broadcast %16 : vector<32x1xf32> to vector<32x128xf32>
    %18 = arith.mulf %13, %17 : vector<32x128xf32>
    %c0_5 = arith.constant 0 : index
    %c0_6 = arith.constant 0 : index
    %19 = vector.load %arg2[%c0_5, %c0_6] : memref<32x128xf32, #tpu.memory_space<vmem>>, vector<32x128xf32>
    tpu.vector_store %arg2[%c0_5, %c0_6], %18 {strides = array<i32>} : memref<32x128xf32, #tpu.memory_space<vmem>>, vector<32x128xf32>,
    return
  }
}

</mosaic_0001>

<bundles_post_ra>
// kernel: _device_topk.1
= control target key start
LH: loop header
LB: loop body
LE: loop exit
PB: predicated region body
PF: predicated region fallthrough
CT: control target
= control target key end

     0   :  { %7 = vsyncpa [#allocation3], 0  ;;  %s315_s9 = smov [#allocation2]   ;;  %s362_s0 = inlined_call_operand.vmem [shape: s32[32,1], index: 0, kind: input, shape index: {}]   ;;  %s363_s1 = inlined_call_operand.hbm [shape: bf16[128,128], index: 1, kind: input, shape index: {}]   ;;  %s364_s2 = inlined_call_operand.vmem [shape: f32[32,128], index: 2, kind: output, shape index: {}]  }
   0x1   :  { %s15_s10 = sshll.u32 %s315_s9, 4  ;;  %s16_s10 = int_to_ptr.vmem [resolvable:$true] %s15_s10 }
   0x2   :  { %s301_s11 = scalar_lea.vmem %s16_s10, 1024  ;;  %p306_p1 = scmp.lt.s32.totalorder %s16_s10, %s16_s10 }
   0x3   :  { %p302_p0 = scmp.ne.s32.totalorder %s16_s10, %s301_s11  ;;  %p307_p2 = scmp.lt.s32.totalorder %s301_s11, %s301_s11 }
   0x5   :  { %p308_p3 = por %p307_p2, %p306_p1 }
   0x7   :  { %p309_p4 = pnand %p308_p3, %p302_p0 }
   0x9   :  { %312 = shalt.err (!%p309_p4)
}
   0xa   :  { %s316_s12 = smov 64   ;;  %s317_s13 = smov 4  }
   0xb   :  { %21 = dma.hbm_to_vmem [thread:$0]  %s363_s1, 1024, %s16_s10, [#allocation3], %s316_s12, %s316_s12, %s317_s13  }
   0xc   :  { %313 = dma.done.wait [#allocation3], 1024  }
   0xd   :  { %314 = vsyncadd [#allocation3], 4294966272  ;;  %v318_v0 = vmov 0   ;;  %v28_v1 = vld [vmem:[%s362_s0 + $0x10] sm:$0xff]  ;;  %v26_v2 = vld [vmem:[%s362_s0] sm:$0xff]  ;;  %v30_v13 = vlaneseq }
   0xe   :  { %268 = vset.pattern.permute.xlu1 %v318_v0  ;;  %267 = vset.pattern.permute.xlu0 %v318_v0  ;;  %v29_v3 = vld [vmem:[%s362_s0 + $0x18] sm:$0xff]  ;;  %v27_v4 = vld [vmem:[%s362_s0 + $0x8] sm:$0xff]  ;;  %v270_v6 = vld [vmem:[#allocation2 + $0x30] sm:$0xff]   ;;  %v319_v19 = vmov 1.0|1.0  }
   0xf   :  { %39 = vperm.xlu1 %268, %v28_v1   ;;  %33 = vperm.xlu0 %267, %v26_v2   ;;  %v269_v5 = vld [vmem:[#allocation2 + $0x38] sm:$0xff]   ;;  %v271_v7 = vld [vmem:[#allocation2 + $0x28] sm:$0xff]   ;;  %v272_v8 = vld [vmem:[#allocation2 + $0x20] sm:$0xff]   ;;  %v31_v16 = vand.u32 127, %v30_v13 }
  0x10   :  { %242 = vmatprep.subr.bf16.mxu0 %v269_v5  ;;  %v273_v9 = vld [vmem:[#allocation2 + $0x18] sm:$0xff]   ;;  %v274_v10 = vld [vmem:[#allocation2 + $0x10] sm:$0xff]   ;;  %v275_v11 = vld [vmem:[#allocation2 + $0x8] sm:$0xff]  }
  0x11   :  { %243 = vmatpush3.bf16.msra.mxu0 %v269_v5  ;;  %v276_v12 = vld [vmem:[#allocation2] sm:$0xff]  }
  0x12   :  { %244 = vmatprep.subr.bf16.mxu0 %v270_v6 }
  0x13   :  { %42 = vperm.xlu1 %268, %v29_v3   ;;  %36 = vperm.xlu0 %267, %v27_v4  }
  0x15   :  { %245 = vmatpush3.bf16.msra.mxu0 %v270_v6 }
  0x16   :  { %246 = vmatprep.subr.bf16.mxu0 %v271_v7 }
  0x19   :  { %247 = vmatpush3.bf16.msra.mxu0 %v271_v7 }
  0x1a   :  { %248 = vmatprep.subr.bf16.mxu0 %v272_v8 }
  0x1d   :  { %249 = vmatpush3.bf16.msra.mxu0 %v272_v8 }
  0x1e   :  { %250 = vmatprep.subr.bf16.mxu0 %v273_v9 }
  0x21   :  { %251 = vmatpush3.bf16.msra.mxu0 %v273_v9 }
  0x22   :  { %252 = vmatprep.subr.bf16.mxu0 %v274_v10 }
  0x25   :  { %253 = vmatpush3.bf16.msra.mxu0 %v274_v10 }
  0x26   :  { %254 = vmatprep.subr.bf16.mxu0 %v275_v11 }
  0x29   :  { %255 = vmatpush3.bf16.msra.mxu0 %v275_v11 }
  0x2a   :  { %256 = vmatprep.subr.bf16.mxu0 %v276_v12 }
  0x2d   :  { %257 = vmatpush3.bf16.msra.mxu0 %v276_v12 }
  0x8a   :  { %v40_v14 = vpop.permute.xlu1 %39  ;;  %v34_v15 = vpop.permute.xlu0 %33 }
  0x8b   :  { %vm46_vm0 = vcmp.eq.s32.totalorder %v31_v16, %v40_v14  ;;  %vm44_vm3 = vcmp.eq.s32.totalorder %v31_v16, %v34_v15 }
  0x8e   :  { %v43_v17 = vpop.permute.xlu1 %42  ;;  %v37_v18 = vpop.permute.xlu0 %36 }
  0x8f   :  { %vm47_vm1 = vcmp.eq.s32.totalorder %v31_v16, %v43_v17  ;;  %vm45_vm2 = vcmp.eq.s32.totalorder %v31_v16, %v37_v18 }
  0x90   :  { %vm230_vm4 = vmpackc.low %vm47_vm1, %vm46_vm0 }
  0x91   :  { %vm228_vm5 = vmpackc.low %vm45_vm2, %vm44_vm3 }
  0x92   :  { %258 = vmatprep.mubr.msk.bf16.mxu0 %vm228_vm5, %v319_v19 }
  0x93   :  { %259 = vmatmul.mubr.msk.bf16.vlgmr.msra.gmra.mxu0 %vm230_vm4, %v319_v19 }
 0x153   :  { %v260_v20 = vpop.f32.mrf.mxu0 }
 0x155   :  { %v156_v21 = vpop.f32.mrf.mxu0 }
 0x156   :  { %171 = vmax.xlane.f32.xlu0 %v156_v21 }
 0x157   :  { %v261_v22 = vpop.f32.mrf.mxu0 }
 0x159   :  { %v159_v23 = vpop.f32.mrf.mxu0 }
 0x15a   :  { %175 = vmax.xlane.f32.xlu0 %v260_v20  ;;  %173 = vmax.xlane.f32.xlu1 %v159_v23 }
 0x15e   :  { %177 = vmax.xlane.f32.xlu0 %v261_v22 }
 0x1df   :  { %v172_v24 = vpop.xlane.xlu0 %171 }
 0x1e0   :  { %v179_v25 = vsub.f32 %v156_v21, %v172_v24 }
 0x1e2   :  { %v183_v26 = vmul.f32 1.442695, %v179_v25 }
 0x1e3   :  { %v176_v27 = vpop.xlane.xlu0 %175  ;;  %v174_v28 = vpop.xlane.xlu1 %173 }
 0x1e4   :  { %277 = vpow2.f32 %v183_v26  ;;  %v181_v29 = vsub.f32 %v260_v20, %v176_v27  ;;  %v180_v30 = vsub.f32 %v159_v23, %v174_v28 }
 0x1e6   :  { %v187_v31 = vmul.f32 1.442695, %v181_v29  ;;  %v185_v32 = vmul.f32 1.442695, %v180_v30 }
 0x1e7   :  { %v178_v33 = vpop.xlane.xlu0 %177 }
 0x1e8   :  { %279 = vpow2.f32 %v187_v31  ;;  %v182_v34 = vsub.f32 %v261_v22, %v178_v33 }
 0x1e9   :  { %281 = vpow2.f32 %v185_v32 }
 0x1ea   :  { %v189_v35 = vmul.f32 1.442695, %v182_v34 }
 0x1ec   :  { %283 = vpow2.f32 %v189_v35 }
 0x1f1   :  { %v278_v36 = vpop.eup %277 }
 0x1f2   :  { %191 = vadd.xlane.f32.xlu1 %v278_v36 }
 0x1f5   :  { %v280_v37 = vpop.eup %279 }
 0x1f6   :  { %v282_v38 = vpop.eup %281  ;;  %195 = vadd.xlane.f32.xlu1 %v280_v37 }
 0x1f7   :  { %193 = vadd.xlane.f32.xlu0 %v282_v38 }
 0x1f9   :  { %v284_v39 = vpop.eup %283 }
 0x1fb   :  { %197 = vadd.xlane.f32.xlu0 %v284_v39 }
 0x27b   :  { %v192_v40 = vpop.xlane.xlu1 %191 }
 0x27c   :  { %285 = vrcp.f32 %v192_v40 }
 0x27f   :  { %v196_v41 = vpop.xlane.xlu1 %195 }
 0x280   :  { %v194_v42 = vpop.xlane.xlu0 %193  ;;  %287 = vrcp.f32 %v196_v41 }
 0x281   :  { %289 = vrcp.f32 %v194_v42 }
 0x284   :  { %v198_v43 = vpop.xlane.xlu0 %197 }
 0x285   :  { %291 = vrcp.f32 %v198_v43 }
 0x289   :  { %v286_v44 = vpop.eup %285 }
 0x28a   :  { %v203_v45 = vmul.f32 %v286_v44, %v278_v36 }
 0x28c   :  { %207 = vst [vmem:[%s364_s2] sm:$0xff] %v203_v45 }
 0x28d   :  { %v288_v46 = vpop.eup %287 }
 0x28e   :  { %v290_v47 = vpop.eup %289  ;;  %v205_v48 = vmul.f32 %v288_v46, %v280_v37 }
 0x28f   :  { %v204_v49 = vmul.f32 %v290_v47, %v282_v38 }
 0x290   :  { %209 = vst [vmem:[%s364_s2 + $0x10] sm:$0xff] %v205_v48 }
 0x291   :  { %208 = vst [vmem:[%s364_s2 + $0x8] sm:$0xff] %v204_v49 }
 0x292   :  { %v292_v50 = vpop.eup %291 }
 0x293   :  { %v206_v51 = vmul.f32 %v292_v50, %v284_v39 }
 0x295   :  { %210 = vst [vmem:[%s364_s2 + $0x18] sm:$0xff] %v206_v51 }
 0x296   :  { %215 = vsyncpa [#allocation3], 1 }

</bundles_post_ra>
